<compile_context>
chip_gen: v5e
topology: v5e:2x2
jax: 0.10.0
libtpu: 0.0.40
codegen_flags: <defaults>
</compile_context>

<pallas_src>
import functools

import jax
import jax.numpy as jnp
from jax import lax
from jax.experimental import pallas as pl
from jax.experimental.pallas import tpu as pltpu

# ---- deterministic "CFG" hyperparameters (stand-in for the original config) ----
DKD_ALPHA = 1.0
DKD_BETA = 8.0
DKD_T = 4.0
DKD_WARMUP = 20.0

_LANE = 128
_PAD_NEG = -30000.0      # class-axis padding logit (exp((pad - max)/T) flushes to 0)
_EPS = 1e-30             # clamp before log (underflow insurance)
_DEFAULT_TB = 256        # default batch tile (multiple of 8); capped per c_pad below
_VMEM_BUDGET = 40 * 1024 * 1024   # working-set budget used to derive the batch tile
_VMEM_LIMIT = 48 * 1024 * 1024    # scoped VMEM limit (safe on v5e/v6e/v7x)


def _dkd_partial_kernel(ls_ref, lt_ref, tgt_ref, out_ref, *, batch, block_b):
    """One batch tile: emit raw per-block partial sums [sum_ce, sum_tckd, sum_nckd].

    ls_ref:  VMEM (TB, Cp) student logits (native dtype)
    lt_ref:  VMEM (TB, Cp) teacher logits (native dtype)
    tgt_ref: VMEM (TB, 1)  int32 targets
    out_ref: VMEM (1, 3, 128) f32 per-block partials (each value broadcast over lanes)
    """
    pid = pl.program_id(0)
    tb, cp = ls_ref.shape
    inv_t = 1.0 / DKD_T

    # valid-row mask for a possibly-partial last batch tile
    row = lax.broadcasted_iota(jnp.int32, (tb, 1), 0) + pid * block_b
    valid = row < batch
    valid_f = valid.astype(jnp.float32)

    # cast + zero invalid rows in one pass (keeps everything finite for padded rows)
    ls = jnp.where(valid, ls_ref[...].astype(jnp.float32), 0.0)
    lt = jnp.where(valid, lt_ref[...].astype(jnp.float32), 0.0)
    tgt = jnp.where(valid, tgt_ref[...], 0)                         # (TB, 1) int32

    col = lax.broadcasted_iota(jnp.int32, (tb, cp), 1)
    is_gt = col == tgt                                              # bool one-hot (TB, Cp)

    def safe_log(x):
        return jnp.log(jnp.maximum(x, _EPS))

    # row maxima and picked (target) logits
    m_s = jnp.max(ls, axis=1, keepdims=True)                        # (TB, 1)
    m_t = jnp.max(lt, axis=1, keepdims=True)
    picked_s = jnp.sum(jnp.where(is_gt, ls, 0.0), axis=1, keepdims=True)
    picked_t = jnp.sum(jnp.where(is_gt, lt, 0.0), axis=1, keepdims=True)

    # ---------------- cross entropy (raw logits) — exp pass 1 ----------------
    lse_s = jnp.log(jnp.sum(jnp.exp(ls - m_s), axis=1, keepdims=True)) + m_s
    ce_part = jnp.sum(valid_f * (lse_s - picked_s))

    # ------- temperature-scaled exponentials shared by TCKD & NCKD (passes 2, 3) -------
    su = (ls - m_s) * inv_t
    tu = (lt - m_t) * inv_t
    e_s = jnp.exp(su)
    e_t = jnp.exp(tu)
    zs = jnp.sum(e_s, axis=1, keepdims=True)                        # full partition (student)
    zt = jnp.sum(e_t, axis=1, keepdims=True)                        # full partition (teacher)
    e_s_nt = jnp.where(is_gt, 0.0, e_s)                             # non-target exps
    e_t_nt = jnp.where(is_gt, 0.0, e_t)
    zs_nt = jnp.sum(e_s_nt, axis=1, keepdims=True)                  # exact non-target mass
    zt_nt = jnp.sum(e_t_nt, axis=1, keepdims=True)
    eps_pick = jnp.exp((picked_s - m_s) * inv_t)                    # (TB, 1), cheap exps
    ept_pick = jnp.exp((picked_t - m_t) * inv_t)

    # ---------------- TCKD (binary target / non-target KL) ----------------
    ps1 = eps_pick / zs
    pt1 = ept_pick / zt
    ps2 = zs_nt / zs
    pt2 = zt_nt / zt
    tckd_rows = (pt1 * (safe_log(pt1) - safe_log(ps1))
                 + pt2 * (safe_log(pt2) - safe_log(ps2)))
    tckd_part = jnp.sum(valid_f * tckd_rows)

    # ---------------- NCKD (gt class masked out) — reuses e_s / e_t ----------------
    # log p_masked = (x - m)/T - log(non-target partition); the target column is
    # excluded exactly by the zeroed pt_m numerator (0 * anything = 0).
    log_zs_nt = safe_log(zs_nt)
    log_zt_nt = safe_log(zt_nt)
    pt_m = e_t_nt / jnp.maximum(zt_nt, _EPS)
    diff = (tu - log_zt_nt) - (su - log_zs_nt)
    nckd_rows = jnp.sum(pt_m * diff, axis=1, keepdims=True)
    nckd_part = jnp.sum(valid_f * nckd_rows)

    # per-block partials, lane-broadcast for an unmasked lane-dense store
    out_ref[0, 0:1, :] = jnp.full((1, _LANE), ce_part, jnp.float32)
    out_ref[0, 1:2, :] = jnp.full((1, _LANE), tckd_part, jnp.float32)
    out_ref[0, 2:3, :] = jnp.full((1, _LANE), nckd_part, jnp.float32)


def _pick_batch_tile(block_b, batch, c_pad, itemsize):
    """Batch tile sized so the per-step working set fits the VMEM budget."""
    # ~8 live full-tile f32 temporaries + 2 inputs x 2 pipeline buffers + padded targets.
    bytes_per_row = c_pad * (8 * 4 + 2 * 2 * itemsize) + 2 * _LANE * 4
    cap = max(int(_VMEM_BUDGET // bytes_per_row), 8)
    cap = (cap // 8) * 8
    tb = min(block_b, cap)
    if tb >= batch:
        return batch                       # full batch dim (always legal)
    return max((tb // 8) * 8, 8)           # multiple of 8 otherwise


def dkd_forward(logits_student, logits_teacher, target, epoch, *, block_b=_DEFAULT_TB):
    """Matches DKD.forward -> (loss, loss_ce, loss_dkd)."""
    B, C = logits_student.shape

    # Pad class axis to a lane multiple (large-negative logits -> zero probability).
    c_pad = ((C + _LANE - 1) // _LANE) * _LANE
    if c_pad != C:
        pad = ((0, 0), (0, c_pad - C))
        ls = jnp.pad(logits_student, pad, constant_values=_PAD_NEG)
        lt = jnp.pad(logits_teacher, pad, constant_values=_PAD_NEG)
    else:
        ls, lt = logits_student, logits_teacher

    itemsize = jnp.dtype(logits_student.dtype).itemsize
    tb = _pick_batch_tile(block_b, B, c_pad, itemsize)
    num_blocks = pl.cdiv(B, tb)
    grid = (num_blocks,)
    tgt2d = target.reshape(B, 1).astype(jnp.int32)

    kernel = functools.partial(_dkd_partial_kernel, batch=B, block_b=tb)
    partials = pl.pallas_call(
        kernel,
        out_shape=jax.ShapeDtypeStruct((num_blocks, 3, _LANE), jnp.float32),
        grid=grid,
        in_specs=[
            pl.BlockSpec((tb, c_pad), lambda i: (i, 0)),   # student logits (native dtype)
            pl.BlockSpec((tb, c_pad), lambda i: (i, 0)),   # teacher logits (native dtype)
            pl.BlockSpec((tb, 1), lambda i: (i, 0)),       # targets
        ],
        out_specs=pl.BlockSpec((1, 3, _LANE), lambda i: (i, 0, 0)),
        compiler_params=pltpu.CompilerParams(
            dimension_semantics=("parallel",),             # independent per-block partials
            vmem_limit_bytes=_VMEM_LIMIT),
    )(ls, lt, tgt2d)

    # Tiny cross-block reduce + scalar post-math in the wrapper.
    sums = jnp.sum(partials[:, :, 0], axis=0)              # (3,) raw sums
    inv_b = 1.0 / B
    t_sq = DKD_T * DKD_T
    loss_ce = sums[0] * inv_b
    tckd = sums[1] * t_sq * inv_b
    nckd = sums[2] * t_sq * inv_b
    factor = jnp.minimum(jnp.asarray(epoch, jnp.float32) / DKD_WARMUP, jnp.float32(1.0))
    loss_dkd = factor * (DKD_ALPHA * tckd + DKD_BETA * nckd)
    loss = loss_ce + loss_dkd
    return loss, loss_ce, loss_dkd


# ---------------- pure-JAX reference (for correctness check) ----------------
def _dkd_reference(ls, lt, target, epoch):
    B, C = ls.shape
    ls = ls.astype(jnp.float32)
    lt = lt.astype(jnp.float32)
    gt = jax.nn.one_hot(target, C, dtype=jnp.float32)
    other = 1.0 - gt
    # cross entropy
    loss_ce = jnp.mean(jax.nn.logsumexp(ls, axis=1) - jnp.sum(ls * gt, axis=1))
    # dkd
    s, t = ls / DKD_T, lt / DKD_T
    ps, pt = jax.nn.softmax(s, axis=1), jax.nn.softmax(t, axis=1)
    ps_cat = jnp.stack([jnp.sum(ps * gt, 1), jnp.sum(ps * other, 1)], axis=1)
    pt_cat = jnp.stack([jnp.sum(pt * gt, 1), jnp.sum(pt * other, 1)], axis=1)
    safe_log = lambda x: jnp.log(jnp.maximum(x, 1e-30))
    tckd = jnp.sum(pt_cat * (safe_log(pt_cat) - safe_log(ps_cat))) * DKD_T ** 2 / B
    # NaN-safe formulation matching torch.F.kl_div semantics (0 * log(0) -> 0):
    log_ps2 = jax.nn.log_softmax(s - 1000.0 * gt, axis=1)
    log_pt2 = jax.nn.log_softmax(t - 1000.0 * gt, axis=1)
    pt2 = jnp.exp(log_pt2)
    nckd = jnp.sum(pt2 * (log_pt2 - log_ps2)) * DKD_T ** 2 / B
    dkd = DKD_ALPHA * tckd + DKD_BETA * nckd
    loss_dkd = jnp.minimum(epoch / DKD_WARMUP, 1.0) * dkd
    return loss_ce + loss_dkd, loss_ce, loss_dkd


if __name__ == "__main__":
    key = jax.random.PRNGKey(0)
    k1, k2, k3 = jax.random.split(key, 3)
    B, C = 8, 32
    logits_student = jax.random.normal(k1, (B, C), dtype=jnp.float32) * 2.0
    logits_teacher = jax.random.normal(k2, (B, C), dtype=jnp.float32) * 2.0
    target = jax.random.randint(k3, (B,), 0, C, dtype=jnp.int32)
    epoch = 5.0

    loss, loss_ce, loss_dkd = dkd_forward(logits_student, logits_teacher, target, epoch)
    jax.block_until_ready((loss, loss_ce, loss_dkd))

    ref = _dkd_reference(logits_student, logits_teacher, target, epoch)
    assert jnp.allclose(loss, ref[0], rtol=1e-4, atol=1e-4), (loss, ref[0])
    assert jnp.allclose(loss_ce, ref[1], rtol=1e-4, atol=1e-4), (loss_ce, ref[1])
    assert jnp.allclose(loss_dkd, ref[2], rtol=1e-4, atol=1e-4), (loss_dkd, ref[2])

    print("KERNEL_OK")
</pallas_src>

<mosaic_0001>
module attributes {stable_mosaic.version = 11 : i64} {
  func.func @_dkd_partial_kernel(%arg0: i32, %arg1: memref<8x128xf32, #tpu.memory_space<vmem>>, %arg2: memref<8x128xf32, #tpu.memory_space<vmem>>, %arg3: memref<8x1xi32, #tpu.memory_space<vmem>>, %arg4: memref<1x3x128xf32, #tpu.memory_space<vmem>>) attributes {dimension_semantics = [#tpu.dimension_semantics<parallel>], iteration_bounds = array<i64: 1>, scalar_prefetch = 0 : i64, scratch_operands = 0 : i64, tpu.core_type = #tpu.core_type<tc>, window_params = [{transform_indices = @transform_0, window_bounds = array<i64: 8, 128>}, {transform_indices = @transform_1, window_bounds = array<i64: 8, 128>}, {transform_indices = @transform_2, window_bounds = array<i64: 8, 1>}, {transform_indices = @transform_3, window_bounds = array<i64: 1, 3, 128>}]} {
    %0 = tpu.iota {dimensions = array<i32: 0>} : vector<8x1xi32>
    %c8_i32 = arith.constant 8 : i32
    %1 = arith.muli %arg0, %c8_i32 : i32
    %2 = vector.broadcast %1 : i32 to vector<8x1xi32>
    %3 = arith.addi %0, %2 : vector<8x1xi32>
    %c8_i32_0 = arith.constant 8 : i32
    %4 = vector.broadcast %c8_i32_0 : i32 to vector<8x1xi32>
    %5 = arith.cmpi slt, %3, %4 : vector<8x1xi32>
    %6 = arith.extui %5 : vector<8x1xi1> to vector<8x1xi32>
    %7 = arith.sitofp %6 : vector<8x1xi32> to vector<8x1xf32>
    %c0 = arith.constant 0 : index
    %c0_1 = arith.constant 0 : index
    %8 = vector.load %arg1[%c0, %c0_1] : memref<8x128xf32, #tpu.memory_space<vmem>>, vector<8x128xf32>
    %cst = arith.constant 0.000000e+00 : f32
    %9 = vector.shape_cast %5 : vector<8x1xi1> to vector<8x1xi1>
    %10 = vector.broadcast %9 : vector<8x1xi1> to vector<8x128xi1>
    %11 = vector.broadcast %cst : f32 to vector<8x128xf32>
    %12 = arith.select %10, %8, %11 : vector<8x128xi1>, vector<8x128xf32>
    %c0_2 = arith.constant 0 : index
    %c0_3 = arith.constant 0 : index
    %13 = vector.load %arg2[%c0_2, %c0_3] : memref<8x128xf32, #tpu.memory_space<vmem>>, vector<8x128xf32>
    %cst_4 = arith.constant 0.000000e+00 : f32
    %14 = vector.shape_cast %5 : vector<8x1xi1> to vector<8x1xi1>
    %15 = vector.broadcast %14 : vector<8x1xi1> to vector<8x128xi1>
    %16 = vector.broadcast %cst_4 : f32 to vector<8x128xf32>
    %17 = arith.select %15, %13, %16 : vector<8x128xi1>, vector<8x128xf32>
    %c0_5 = arith.constant 0 : index
    %c0_6 = arith.constant 0 : index
    %18 = vector.load %arg3[%c0_5, %c0_6] : memref<8x1xi32, #tpu.memory_space<vmem>>, vector<8x1xi32>
    %c0_i32 = arith.constant 0 : i32
    %19 = vector.broadcast %c0_i32 : i32 to vector<8x1xi32>
    %20 = arith.select %5, %18, %19 : vector<8x1xi1>, vector<8x1xi32>
    %21 = tpu.iota {dimensions = array<i32: 1>} : vector<8x128xi32>
    %22 = vector.broadcast %20 : vector<8x1xi32> to vector<8x128xi32>
    %23 = arith.cmpi eq, %21, %22 : vector<8x128xi32>
    %cst_7 = arith.constant dense<0xFF800000> : vector<8xf32>
    %24 = vector.multi_reduction <maximumf>, %12, %cst_7 [1] : vector<8x128xf32> to vector<8xf32>
    %25 = vector.shape_cast %24 : vector<8xf32> to vector<8x1xf32>
    %cst_8 = arith.constant dense<0xFF800000> : vector<8xf32>
    %26 = vector.multi_reduction <maximumf>, %17, %cst_8 [1] : vector<8x128xf32> to vector<8xf32>
    %27 = vector.shape_cast %26 : vector<8xf32> to vector<8x1xf32>
    %cst_9 = arith.constant 0.000000e+00 : f32
    %28 = vector.broadcast %cst_9 : f32 to vector<8x128xf32>
    %29 = arith.select %23, %12, %28 : vector<8x128xi1>, vector<8x128xf32>
    %cst_10 = arith.constant dense<0.000000e+00> : vector<8xf32>
    %30 = vector.multi_reduction <add>, %29, %cst_10 [1] : vector<8x128xf32> to vector<8xf32>
    %31 = vector.shape_cast %30 : vector<8xf32> to vector<8x1xf32>
    %cst_11 = arith.constant 0.000000e+00 : f32
    %32 = vector.broadcast %cst_11 : f32 to vector<8x128xf32>
    %33 = arith.select %23, %17, %32 : vector<8x128xi1>, vector<8x128xf32>
    %cst_12 = arith.constant dense<0.000000e+00> : vector<8xf32>
    %34 = vector.multi_reduction <add>, %33, %cst_12 [1] : vector<8x128xf32> to vector<8xf32>
    %35 = vector.shape_cast %34 : vector<8xf32> to vector<8x1xf32>
    %36 = vector.broadcast %25 : vector<8x1xf32> to vector<8x128xf32>
    %37 = arith.subf %12, %36 : vector<8x128xf32>
    %38 = math.exp %37 : vector<8x128xf32>
    %cst_13 = arith.constant dense<0.000000e+00> : vector<8xf32>
    %39 = vector.multi_reduction <add>, %38, %cst_13 [1] : vector<8x128xf32> to vector<8xf32>
    %40 = vector.shape_cast %39 : vector<8xf32> to vector<8x1xf32>
    %41 = math.log %40 : vector<8x1xf32>
    %42 = arith.addf %41, %25 : vector<8x1xf32>
    %43 = arith.subf %42, %31 : vector<8x1xf32>
    %44 = arith.mulf %7, %43 : vector<8x1xf32>
    %45 = vector.shape_cast %44 : vector<8x1xf32> to vector<1x8x1xf32>
    %cst_14 = arith.constant dense<0.000000e+00> : vector<1xf32>
    %46 = vector.multi_reduction <add>, %45, %cst_14 [1, 2] : vector<1x8x1xf32> to vector<1xf32>
    %47 = vector.shape_cast %46 : vector<1xf32> to vector<1x1x1xf32>
    %48 = vector.extract %47[0, 0, 0] : f32 from vector<1x1x1xf32>
    %49 = vector.broadcast %25 : vector<8x1xf32> to vector<8x128xf32>
    %50 = arith.subf %12, %49 : vector<8x128xf32>
    %cst_15 = arith.constant 2.500000e-01 : f32
    %51 = vector.broadcast %cst_15 : f32 to vector<8x128xf32>
    %52 = arith.mulf %50, %51 : vector<8x128xf32>
    %53 = vector.broadcast %27 : vector<8x1xf32> to vector<8x128xf32>
    %54 = arith.subf %17, %53 : vector<8x128xf32>
    %cst_16 = arith.constant 2.500000e-01 : f32
    %55 = vector.broadcast %cst_16 : f32 to vector<8x128xf32>
    %56 = arith.mulf %54, %55 : vector<8x128xf32>
    %57 = math.exp %52 : vector<8x128xf32>
    %58 = math.exp %56 : vector<8x128xf32>
    %cst_17 = arith.constant dense<0.000000e+00> : vector<8xf32>
    %59 = vector.multi_reduction <add>, %57, %cst_17 [1] : vector<8x128xf32> to vector<8xf32>
    %60 = vector.shape_cast %59 : vector<8xf32> to vector<8x1xf32>
    %cst_18 = arith.constant dense<0.000000e+00> : vector<8xf32>
    %61 = vector.multi_reduction <add>, %58, %cst_18 [1] : vector<8x128xf32> to vector<8xf32>
    %62 = vector.shape_cast %61 : vector<8xf32> to vector<8x1xf32>
    %cst_19 = arith.constant 0.000000e+00 : f32
    %63 = vector.broadcast %cst_19 : f32 to vector<8x128xf32>
    %64 = arith.select %23, %63, %57 : vector<8x128xi1>, vector<8x128xf32>
    %cst_20 = arith.constant 0.000000e+00 : f32
    %65 = vector.broadcast %cst_20 : f32 to vector<8x128xf32>
    %66 = arith.select %23, %65, %58 : vector<8x128xi1>, vector<8x128xf32>
    %cst_21 = arith.constant dense<0.000000e+00> : vector<8xf32>
    %67 = vector.multi_reduction <add>, %64, %cst_21 [1] : vector<8x128xf32> to vector<8xf32>
    %68 = vector.shape_cast %67 : vector<8xf32> to vector<8x1xf32>
    %cst_22 = arith.constant dense<0.000000e+00> : vector<8xf32>
    %69 = vector.multi_reduction <add>, %66, %cst_22 [1] : vector<8x128xf32> to vector<8xf32>
    %70 = vector.shape_cast %69 : vector<8xf32> to vector<8x1xf32>
    %71 = arith.subf %31, %25 : vector<8x1xf32>
    %cst_23 = arith.constant 2.500000e-01 : f32
    %72 = vector.broadcast %cst_23 : f32 to vector<8x1xf32>
    %73 = arith.mulf %71, %72 : vector<8x1xf32>
    %74 = math.exp %73 : vector<8x1xf32>
    %75 = arith.subf %35, %27 : vector<8x1xf32>
    %cst_24 = arith.constant 2.500000e-01 : f32
    %76 = vector.broadcast %cst_24 : f32 to vector<8x1xf32>
    %77 = arith.mulf %75, %76 : vector<8x1xf32>
    %78 = math.exp %77 : vector<8x1xf32>
    %79 = arith.divf %74, %60 : vector<8x1xf32>
    %80 = arith.divf %78, %62 : vector<8x1xf32>
    %81 = arith.divf %68, %60 : vector<8x1xf32>
    %82 = arith.divf %70, %62 : vector<8x1xf32>
    %cst_25 = arith.constant 1.000000e-30 : f32
    %83 = vector.broadcast %cst_25 : f32 to vector<8x1xf32>
    %84 = arith.maximumf %80, %83 : vector<8x1xf32>
    %85 = math.log %84 : vector<8x1xf32>
    %cst_26 = arith.constant 1.000000e-30 : f32
    %86 = vector.broadcast %cst_26 : f32 to vector<8x1xf32>
    %87 = arith.maximumf %79, %86 : vector<8x1xf32>
    %88 = math.log %87 : vector<8x1xf32>
    %89 = arith.subf %85, %88 : vector<8x1xf32>
    %90 = arith.mulf %80, %89 : vector<8x1xf32>
    %cst_27 = arith.constant 1.000000e-30 : f32
    %91 = vector.broadcast %cst_27 : f32 to vector<8x1xf32>
    %92 = arith.maximumf %82, %91 : vector<8x1xf32>
    %93 = math.log %92 : vector<8x1xf32>
    %cst_28 = arith.constant 1.000000e-30 : f32
    %94 = vector.broadcast %cst_28 : f32 to vector<8x1xf32>
    %95 = arith.maximumf %81, %94 : vector<8x1xf32>
    %96 = math.log %95 : vector<8x1xf32>
    %97 = arith.subf %93, %96 : vector<8x1xf32>
    %98 = arith.mulf %82, %97 : vector<8x1xf32>
    %99 = arith.addf %90, %98 : vector<8x1xf32>
    %100 = arith.mulf %7, %99 : vector<8x1xf32>
    %101 = vector.shape_cast %100 : vector<8x1xf32> to vector<1x8x1xf32>
    %cst_29 = arith.constant dense<0.000000e+00> : vector<1xf32>
    %102 = vector.multi_reduction <add>, %101, %cst_29 [1, 2] : vector<1x8x1xf32> to vector<1xf32>
    %103 = vector.shape_cast %102 : vector<1xf32> to vector<1x1x1xf32>
    %104 = vector.extract %103[0, 0, 0] : f32 from vector<1x1x1xf32>
    %cst_30 = arith.constant 1.000000e-30 : f32
    %105 = vector.broadcast %cst_30 : f32 to vector<8x1xf32>
    %106 = arith.maximumf %68, %105 : vector<8x1xf32>
    %107 = math.log %106 : vector<8x1xf32>
    %cst_31 = arith.constant 1.000000e-30 : f32
    %108 = vector.broadcast %cst_31 : f32 to vector<8x1xf32>
    %109 = arith.maximumf %70, %108 : vector<8x1xf32>
    %110 = math.log %109 : vector<8x1xf32>
    %cst_32 = arith.constant 1.000000e-30 : f32
    %111 = vector.broadcast %cst_32 : f32 to vector<8x1xf32>
    %112 = arith.maximumf %70, %111 : vector<8x1xf32>
    %113 = vector.broadcast %112 : vector<8x1xf32> to vector<8x128xf32>
    %114 = arith.divf %66, %113 : vector<8x128xf32>
    %115 = vector.broadcast %110 : vector<8x1xf32> to vector<8x128xf32>
    %116 = arith.subf %56, %115 : vector<8x128xf32>
    %117 = vector.broadcast %107 : vector<8x1xf32> to vector<8x128xf32>
    %118 = arith.subf %52, %117 : vector<8x128xf32>
    %119 = arith.subf %116, %118 : vector<8x128xf32>
    %120 = arith.mulf %114, %119 : vector<8x128xf32>
    %cst_33 = arith.constant dense<0.000000e+00> : vector<8xf32>
    %121 = vector.multi_reduction <add>, %120, %cst_33 [1] : vector<8x128xf32> to vector<8xf32>
    %122 = vector.shape_cast %121 : vector<8xf32> to vector<8x1xf32>
    %123 = arith.mulf %7, %122 : vector<8x1xf32>
    %124 = vector.shape_cast %123 : vector<8x1xf32> to vector<1x8x1xf32>
    %cst_34 = arith.constant dense<0.000000e+00> : vector<1xf32>
    %125 = vector.multi_reduction <add>, %124, %cst_34 [1, 2] : vector<1x8x1xf32> to vector<1xf32>
    %126 = vector.shape_cast %125 : vector<1xf32> to vector<1x1x1xf32>
    %127 = vector.extract %126[0, 0, 0] : f32 from vector<1x1x1xf32>
    %128 = vector.broadcast %48 : f32 to vector<1x128xf32>
    %c0_35 = arith.constant 0 : index
    %c0_36 = arith.constant 0 : index
    %c0_37 = arith.constant 0 : index
    %129 = vector.load %arg4[%c0_35, %c0_36, %c0_37] : memref<1x3x128xf32, #tpu.memory_space<vmem>>, vector<1x1x128xf32>
    %130 = vector.shape_cast %129 : vector<1x1x128xf32> to vector<1x128xf32>
    %131 = vector.shape_cast %128 : vector<1x128xf32> to vector<1x1x128xf32>
    tpu.vector_store %arg4[%c0_35, %c0_36, %c0_37], %131 {strides = array<i32>} : memref<1x3x128xf32, #tpu.memory_space<vmem>>, vector<1x1x128xf32>,
    %132 = vector.broadcast %104 : f32 to vector<1x128xf32>
    %c0_38 = arith.constant 0 : index
    %c1 = arith.constant 1 : index
    %c0_39 = arith.constant 0 : index
    %133 = vector.load %arg4[%c0_38, %c1, %c0_39] : memref<1x3x128xf32, #tpu.memory_space<vmem>>, vector<1x1x128xf32>
    %134 = vector.shape_cast %133 : vector<1x1x128xf32> to vector<1x128xf32>
    %135 = vector.shape_cast %132 : vector<1x128xf32> to vector<1x1x128xf32>
    tpu.vector_store %arg4[%c0_38, %c1, %c0_39], %135 {strides = array<i32>} : memref<1x3x128xf32, #tpu.memory_space<vmem>>, vector<1x1x128xf32>,
    %136 = vector.broadcast %127 : f32 to vector<1x128xf32>
    %c0_40 = arith.constant 0 : index
    %c2 = arith.constant 2 : index
    %c0_41 = arith.constant 0 : index
    %137 = vector.load %arg4[%c0_40, %c2, %c0_41] : memref<1x3x128xf32, #tpu.memory_space<vmem>>, vector<1x1x128xf32>
    %138 = vector.shape_cast %137 : vector<1x1x128xf32> to vector<1x128xf32>
    %139 = vector.shape_cast %136 : vector<1x128xf32> to vector<1x1x128xf32>
    tpu.vector_store %arg4[%c0_40, %c2, %c0_41], %139 {strides = array<i32>} : memref<1x3x128xf32, #tpu.memory_space<vmem>>, vector<1x1x128xf32>,
    return
  }
  func.func @transform_0(%arg0: i32) -> (i32, i32) {
    %c0_i32 = arith.constant 0 : i32
    %c0_i32_0 = arith.constant 0 : i32
    return %arg0, %c0_i32 : i32, i32
  }
  func.func @transform_1(%arg0: i32) -> (i32, i32) {
    %c0_i32 = arith.constant 0 : i32
    %c0_i32_0 = arith.constant 0 : i32
    return %arg0, %c0_i32 : i32, i32
  }
  func.func @transform_2(%arg0: i32) -> (i32, i32) {
    %c0_i32 = arith.constant 0 : i32
    %c0_i32_0 = arith.constant 0 : i32
    return %arg0, %c0_i32 : i32, i32
  }
  func.func @transform_3(%arg0: i32) -> (i32, i32, i32) {
    %c0_i32 = arith.constant 0 : i32
    %c0_i32_0 = arith.constant 0 : i32
    %c0_i32_1 = arith.constant 0 : i32
    return %arg0, %c0_i32, %c0_i32_0 : i32, i32, i32
  }
}

</mosaic_0001>

<bundles_post_ra>
// kernel: tpu_custom_call.1
= control target key start
LH: loop header
LB: loop body
LE: loop exit
PB: predicated region body
PF: predicated region fallthrough
CT: control target
= control target key end

     0   :  { %8 = vsyncpa [#allocation3], 0  ;;  %s280_s15 = smov [#allocation2]   ;;  %s344_s0 = inlined_call_operand.vmem [shape: f32[8,128], index: 0, kind: input, shape index: {}]   ;;  %s345_s1 = inlined_call_operand.hbm [shape: f32[8,128], index: 1, kind: input, shape index: {}]   ;;  %s346_s2 = inlined_call_operand.vmem [shape: s32[8,1], index: 2, kind: input, shape index: {}]   ;;  %s347_s3 = inlined_call_operand.vmem [shape: f32[1,3,128], index: 3, kind: output, shape index: {}]  }
   0x1   :  { %s16_s14 = sshll.u32 %s345_s1, 4  ;;  %s18_s16 = sshll.u32 %s280_s15, 4  ;;  %s17_s14 = int_to_ptr.hbm [resolvable:$true] %s16_s14  ;;  %s19_s16 = int_to_ptr.vmem [resolvable:$true] %s18_s16 }
   0x2   :  { %21 = dma.hbm_to_vmem [thread:$0]  %s17_s14, 128, %s19_s16, [#allocation3]  }
   0x3   :  { %278 = dma.done.wait [#allocation3], 128  }
   0x4   :  { %279 = vsyncadd [#allocation3], 4294967168  ;;  %v281_v0 = vmov 0   ;;  %v39_v1 = vld [vmem:[#allocation2] sm:$0xff]  ;;  %v43_v7 = vlaneseq  ;;  %vm69_vm13 = vcmask 7168  }
   0x5   :  { %222 = vset.pattern.permute.xlu1 %v281_v0  ;;  %223 = vset.pattern.permute.xlu0 %v281_v0  ;;  %v41_v2 = vld [vmem:[%s346_s2] sm:$0xff] }
   0x6   :  { %51 = vmax.xlane.f32.xlu0 %v39_v1  ;;  %46 = vperm.xlu1 %222, %v41_v2   ;;  %v36_v3 = vld [vmem:[%s344_s0] sm:$0xff]  ;;  %v44_v9 = vand.u32 127, %v43_v7 }
   0xe   :  { %49 = vmax.xlane.f32.xlu0 %v36_v3 }
  0x78   :  { %v47_v11 = vpop.permute.xlu1 %46 }
  0x79   :  { %v52_v4 = vpop.xlane.xlu0 %51  ;;  %vm48_vm0 = vcmp.eq.s32.totalorder %v44_v9, %v47_v11 }
  0x7a   :  { %v81_v5 = vsub.f32 %v39_v1, %v52_v4  ;;  %v56_v18 = vsel %vm48_vm0, %v39_v1, 0.0  ;;  %v53_v21 = vsel %vm48_vm0, %v36_v3, 0.0 }
  0x7c   :  { %v311_v6 = vmul.f32 0.25, %v81_v5 }
  0x7e   :  { %v85_v8 = vmul.f32 1.442695, %v311_v6 }
  0x80   :  { %224 = vpow2.f32 %v85_v8 }
  0x81   :  { %v314_v10 = vpop.xlane.xlu0 %49 }
  0x82   :  { %v59_v12 = vsub.f32 %v36_v3, %v314_v10 }
  0x84   :  { %v317_v13 = vmul.f32 0.25, %v59_v12  ;;  %v60_v20 = vmul.f32 1.442695, %v59_v12 }
  0x86   :  { %v225_v14 = vpop.eup %224  ;;  %v83_v15 = vmul.f32 1.442695, %v317_v13 }
  0x87   :  { %89 = vadd.xlane.f32.xlu0 %v225_v14  ;;  %v92_v16 = vsel %vm48_vm0, 0.0, %v225_v14 }
  0x88   :  { %95 = vadd.xlane.f32.xlu1 %v92_v16  ;;  %226 = vpow2.f32 %v83_v15 }
  0x89   :  { %228 = vpow2.f32 %v60_v20 }
  0x8e   :  { %v227_v17 = vpop.eup %226 }
  0x8f   :  { %57 = vadd.xlane.f32.xlu0 %v56_v18  ;;  %v91_v19 = vsel %vm48_vm0, 0.0, %v227_v17  ;;  %v229_v22 = vpop.eup %228 }
  0x90   :  { %93 = vadd.xlane.f32.xlu2 %v91_v19 }
  0x98   :  { %87 = vadd.xlane.f32.xlu2 %v227_v17 }
  0xa0   :  { %54 = vadd.xlane.f32.xlu2 %v53_v21 }
  0xa8   :  { %62 = vadd.xlane.f32.xlu2 %v229_v22 }
  0xfa   :  { %v90_v23 = vpop.xlane.xlu0 %89 }
  0xfb   :  { %230 = vrcp.f32 %v90_v23  ;;  %v320_v24 = vpop.xlane.xlu1 %95  ;;  %v131_v52 = vand.u32 2147483648, %v90_v23  ;;  %vm125_vm6 = vweird.f32 %v90_v23  ;;  %v129_v55 = vand.u32 2147483647, %v90_v23 }
  0xfc   :  { %v168_v25 = vmax.f32 %v320_v24, 1e-30 }
  0xfd   :  { %v132_v60 = vor.u32 1.1754944e-38, %v131_v52  ;;  %vm130_vm8 = vcmp.eq.f32.partialorder %v129_v55, 8.507059e+37 }
  0xfe   :  { %232 = vrcp.f32 %v168_v25  ;;  %v182_v37 = vand.u32 2147483648, %v168_v25  ;;  %v180_v39 = vand.u32 2147483647, %v168_v25  ;;  %vm176_vm2 = vweird.f32 %v168_v25 }
  0xff   :  { %234 = vlog2.f32 %v168_v25 }
 0x100   :  { %v183_v46 = vor.u32 1.1754944e-38, %v182_v37  ;;  %vm181_vm4 = vcmp.eq.f32.partialorder %v180_v39, 8.507059e+37 }
 0x101   :  { %v231_v26 = vpop.eup %230 }
 0x102   :  { %v121_v27 = vmul.f32 %v231_v26, %v90_v23  ;;  %v58_v28 = vpop.xlane.xlu0 %57  ;;  %vm126_vm5 = vweird.f32 %v231_v26 }
 0x103   :  { %v323_v29 = vpop.xlane.xlu2 %93  ;;  %v101_v34 = vsub.f32 %v58_v28, %v52_v4  ;;  %vm127_vm7 = vmor %vm125_vm6, %vm126_vm5 }
 0x104   :  { %v233_v30 = vpop.eup %232  ;;  %v165_v31 = vmax.f32 %v323_v29, 1e-30  ;;  %v122_v33 = vsub.f32 1.0, %v121_v27 }
 0x105   :  { %v172_v32 = vmul.f32 %v233_v30, %v168_v25  ;;  %v235_v36 = vpop.eup %234  ;;  %vm177_vm1 = vweird.f32 %v233_v30  ;;  %v102_v41 = vmul.f32 0.25, %v101_v34 }
 0x106   :  { %236 = vlog2.f32 %v165_v31  ;;  %v123_v40 = vmul.f32 %v231_v26, %v122_v33  ;;  %v170_v43 = vmul.f32 0.6931472, %v235_v36  ;;  %vm178_vm3 = vmor %vm176_vm2, %vm177_vm1 }
 0x107   :  { %v173_v35 = vsub.f32 1.0, %v172_v32  ;;  %v103_v50 = vmul.f32 1.442695, %v102_v41 }
 0x108   :  { %v124_v49 = vadd.f32 %v231_v26, %v123_v40  ;;  %v186_v53 = vsub.f32 %v311_v6, %v170_v43 }
 0x109   :  { %v174_v38 = vmul.f32 %v233_v30, %v173_v35 }
 0x10a   :  { %v128_v59 = vsel %vm127_vm7, %v231_v26, %v124_v49 }
 0x10b   :  { %v88_v42 = vpop.xlane.xlu2 %87  ;;  %v175_v44 = vadd.f32 %v233_v30, %v174_v38  ;;  %v133_v1 = vsel %vm130_vm8, %v132_v60, %v128_v59 }
 0x10c   :  { %v237_v45 = vpop.eup %236  ;;  %238 = vrcp.f32 %v88_v42  ;;  %v116_v3 = vand.u32 2147483648, %v88_v42  ;;  %v114_v6 = vand.u32 2147483647, %v88_v42  ;;  %v136_v8 = vmul.f32 %v133_v1, %v320_v24 }
 0x10d   :  { %v167_v47 = vmul.f32 0.6931472, %v237_v45  ;;  %v179_v48 = vsel %vm178_vm3, %v233_v30, %v175_v44  ;;  %240 = vpow2.f32 %v103_v50  ;;  %vm110_vm10 = vweird.f32 %v88_v42 }
 0x10e   :  { %v184_v51 = vsel %vm181_vm4, %v183_v46, %v179_v48  ;;  %v117_v12 = vor.u32 1.1754944e-38, %v116_v3  ;;  %vm115_vm12 = vcmp.eq.f32.partialorder %v114_v6, 8.507059e+37 }
 0x10f   :  { %v187_v54 = vsub.f32 %v317_v13, %v167_v47  ;;  %v185_v56 = vmul.f32 %v184_v51, %v92_v16  ;;  %v145_v16 = vmax.f32 %v136_v8, 1e-30 }
 0x111   :  { %v188_v57 = vsub.f32 %v186_v53, %v187_v54 }
 0x112   :  { %v239_v58 = vpop.eup %238 }
 0x113   :  { %v106_v61 = vmul.f32 %v239_v58, %v88_v42  ;;  %v55_v62 = vpop.xlane.xlu2 %54  ;;  %v189_v63 = vmul.f32 %v188_v57, %v185_v56  ;;  %vm111_vm9 = vweird.f32 %v239_v58  ;;  %v241_v7 = vpop.eup %240 }
 0x114   :  { %v97_v0 = vsub.f32 %v55_v62, %v314_v10  ;;  %vm112_vm11 = vmor %vm110_vm10, %vm111_vm9  ;;  %v134_v15 = vmul.f32 %v241_v7, %v133_v1 }
 0x115   :  { %v107_v2 = vsub.f32 1.0, %v106_v61  ;;  %190 = vadd.xlane.f32.xlu0 %v189_v63 }
 0x116   :  { %v98_v4 = vmul.f32 0.25, %v97_v0  ;;  %v137_v19 = vmax.f32 %v134_v15, 1e-30 }
 0x117   :  { %v108_v5 = vmul.f32 %v239_v58, %v107_v2 }
 0x118   :  { %v99_v9 = vmul.f32 1.442695, %v98_v4 }
 0x119   :  { %v109_v11 = vadd.f32 %v239_v58, %v108_v5 }
 0x11a   :  { %242 = vpow2.f32 %v99_v9 }
 0x11b   :  { %v113_v13 = vsel %vm112_vm11, %v239_v58, %v109_v11  ;;  %v63_v14 = vpop.xlane.xlu2 %62 }
 0x11c   :  { %v118_v17 = vsel %vm115_vm12, %v117_v12, %v113_v13  ;;  %244 = vlog2.f32 %v63_v14 }
 0x11d   :  { %v135_v18 = vmul.f32 %v118_v17, %v323_v29  ;;  %246 = vlog2.f32 %v145_v16 }
 0x11f   :  { %v148_v20 = vmax.f32 %v135_v18, 1e-30 }
 0x120   :  { %v243_v21 = vpop.eup %242 }
 0x121   :  { %v119_v22 = vmul.f32 %v243_v21, %v118_v17  ;;  %248 = vlog2.f32 %v148_v20 }
 0x122   :  { %v245_v23 = vpop.eup %244  ;;  %250 = vlog2.f32 %v137_v19 }
 0x123   :  { %v65_v24 = vmul.f32 0.6931472, %v245_v23  ;;  %v140_v25 = vmax.f32 %v119_v22, 1e-30  ;;  %v247_v27 = vpop.eup %246 }
 0x124   :  { %v147_v33 = vmul.f32 0.6931472, %v247_v27 }
 0x125   :  { %v66_v26 = vadd.f32 %v65_v24, %v314_v10  ;;  %252 = vlog2.f32 %v140_v25 }
 0x127   :  { %v249_v28 = vpop.eup %248  ;;  %v67_v30 = vsub.f32 %v66_v26, %v55_v62 }
 0x128   :  { %v150_v31 = vmul.f32 0.6931472, %v249_v28  ;;  %v251_v32 = vpop.eup %250 }
 0x129   :  { %v70_v29 = vsel %vm69_vm13, %v67_v30, 0.0  ;;  %v139_v35 = vmul.f32 0.6931472, %v251_v32 }
 0x12a   :  { %71 = vadd.xlane.f32.xlu2 %v70_v29  ;;  %v151_v37 = vsub.f32 %v147_v33, %v150_v31 }
 0x12b   :  { %v253_v34 = vpop.eup %252 }
 0x12c   :  { %v142_v36 = vmul.f32 0.6931472, %v253_v34  ;;  %v152_v40 = vmul.f32 %v151_v37, %v136_v8 }
 0x12e   :  { %v143_v38 = vsub.f32 %v139_v35, %v142_v36 }
 0x130   :  { %v144_v39 = vmul.f32 %v143_v38, %v134_v15 }
 0x132   :  { %v153_v41 = vadd.f32 %v152_v40, %v144_v39 }
 0x134   :  { %v155_v10 = vsel %vm69_vm13, %v153_v41, 0.0 }
 0x135   :  { %156 = vadd.xlane.f32.xlu0 %v155_v10 }
 0x188   :  { %v191_v42 = vpop.xlane.xlu0 %190 }
 0x189   :  { %v193_v43 = vsel %vm69_vm13, %v191_v42, 0.0 }
 0x18a   :  { %194 = vadd.xlane.f32.xlu2 %v193_v43 }
 0x19d   :  { %v72_v44 = vpop.xlane.xlu2 %71 }
 0x19e   :  { %v73_v45 = vrot.slane %v72_v44, 4 }
 0x1a0   :  { %v74_v46 = vadd.f32 %v73_v45, %v72_v44 }
 0x1a2   :  { %v75_v47 = vrot.slane %v74_v46, 2 }
 0x1a4   :  { %v76_v48 = vadd.f32 %v75_v47, %v74_v46 }
 0x1a6   :  { %v77_v49 = vrot.slane %v76_v48, 1 }
 0x1a8   :  { %v157_v50 = vpop.xlane.xlu0 %156  ;;  %v78_v51 = vadd.f32 %v77_v49, %v76_v48 }
 0x1a9   :  { %v158_v52 = vrot.slane %v157_v50, 4 }
 0x1aa   :  { %214 = vpush %v78_v51 }
 0x1ab   :  { %v159_v53 = vadd.f32 %v158_v52, %v157_v50 }
 0x1ad   :  { %v160_v54 = vrot.slane %v159_v53, 2 }
 0x1af   :  { %v161_v55 = vadd.f32 %v160_v54, %v159_v53 }
 0x1b1   :  { %v162_v56 = vrot.slane %v161_v55, 1 }
 0x1b3   :  { %v163_v57 = vadd.f32 %v162_v56, %v161_v55 }
 0x1b5   :  { %216 = vpush %v163_v57 }
 0x1db   :  { %s215_s0 = spop %214 }
 0x1dc   :  { %v203_v58 = vstv %s215_s0 }
 0x1dd   :  { %204 = vst [vmem:[%s347_s3] sm:$0x1] %v203_v58 }
 0x1e6   :  { %s217_s21 = spop %216 }
 0x1e7   :  { %v205_v59 = vstv %s217_s21 }
 0x1e8   :  { %206 = vst [vmem:[%s347_s3 + $0x1] sm:$0x1] %v205_v59 }
 0x1fd   :  { %v195_v60 = vpop.xlane.xlu2 %194 }
 0x1fe   :  { %v196_v61 = vrot.slane %v195_v60, 4 }
 0x200   :  { %v197_v62 = vadd.f32 %v196_v61, %v195_v60 }
 0x202   :  { %v198_v63 = vrot.slane %v197_v62, 2 }
 0x204   :  { %v199_v0 = vadd.f32 %v198_v63, %v197_v62 }
 0x206   :  { %v200_v1 = vrot.slane %v199_v0, 1 }
 0x208   :  { %v201_v2 = vadd.f32 %v200_v1, %v199_v0 }
 0x20a   :  { %218 = vpush %v201_v2 }
 0x23b   :  { %s219_s24 = spop %218 }
 0x23c   :  { %v207_v3 = vstv %s219_s24 }
 0x23d   :  { %208 = vst [vmem:[%s347_s3 + $0x2] sm:$0x1] %v207_v3 }
 0x23e   :  { %213 = vsyncpa [#allocation3], 1 }

</bundles_post_ra>
